<compile_context>
chip_gen: v5e
topology: v5e:2x2
jax: 0.10.0
libtpu: 0.0.40
codegen_flags: <defaults>
</compile_context>

<pallas_src>
import functools

import jax
import jax.numpy as jnp
from jax import lax
from jax.experimental import pallas as pl
from jax.experimental.pallas import tpu as pltpu


def _round_up(x, m):
    return (x + m - 1) // m * m


def _choose_chunk(block_n, D, L):
    """Rows per vreg-resident chunk: keep (D+4) live (chunk, L) arrays <= ~48 vregs."""
    lane_tiles = -(-L // 128)
    for c in (32, 16, 8):
        if block_n % c == 0 and (D + 4) * (c // 8) * lane_tiles <= 48:
            return c
    return 8


# ---------------------------------------------------------------------------
# VALU path: small shapelets.  Per-tap multiply/add on vreg-resident row chunks.
# ---------------------------------------------------------------------------
def _valu_kernel(x_ref, q2_ref, qq_ref, w_ref, b_ref, y_ref, dmin_ref, *, chunk):
    D, TN, L = x_ref.shape
    M = q2_ref.shape[1]
    W = L - M + 1                                    # valid sliding positions

    QQ = qq_ref[0]                                   # SMEM scalar
    q2 = [[q2_ref[d, t] for t in range(M)] for d in range(D)]  # 2*Q taps (SMEM)

    w_row = w_ref[...]                               # (1, 2)
    b_row = b_ref[...]                               # (1, 2)

    col = lax.broadcasted_iota(jnp.int32, (chunk, L), 1)
    valid = col < W

    nchunks = TN // chunk

    def body(c, carry):
        r0 = pl.multiple_of(c * chunk, chunk)
        planes = [x_ref[d, pl.ds(r0, chunk), :] for d in range(D)]   # (chunk, L)

        # ||window||^2 energy term, channel-reduced once (VALU only).
        x2 = planes[0] * planes[0]
        for d in range(1, D):
            x2 = x2 + planes[d] * planes[d]

        # DIS[n, j] = QQ + sum_t T_t[n, j+t],  T_t = X2 - 2*sum_d X_d*Q[d, t].
        # Each tap: VALU mul/adds + one lane roll (XLU slot is otherwise idle).
        acc = None
        for t in range(M):
            ct = planes[0] * q2[0][t]
            for d in range(1, D):
                ct = ct + planes[d] * q2[d][t]
            tt = x2 - ct
            if t == 0:
                acc = tt
            else:
                acc = acc + pltpu.roll(tt, shift=L - t, axis=1)

        acc = jnp.where(valid, acc, jnp.inf)         # mask wrapped positions
        dmin = QQ + jnp.min(acc, axis=1, keepdims=True)      # (chunk, 1)

        dmin_ref[pl.ds(r0, chunk), :] = dmin
        y_ref[pl.ds(r0, chunk), :] = dmin * w_row + b_row    # CLS linear head
        return carry

    lax.fori_loop(0, nchunks, body, 0)


# ---------------------------------------------------------------------------
# MXU path: large shapelets.  XX and QX as banded-Toeplitz matmuls.
# ---------------------------------------------------------------------------
def _mxu_kernel(x_ref, bmat_ref, qq_ref, w_ref, b_ref, y_ref, dmin_ref, *, w_valid):
    D, TN, L = x_ref.shape

    planes = [x_ref[d] for d in range(D)]            # (TN, L) slabs
    x2 = planes[0] * planes[0]
    for d in range(1, D):
        x2 = x2 + planes[d] * planes[d]

    # dis[n, j] = sum_t x2[n, j+t] - 2 * sum_{d,t} X[n, d, j+t] * Q[d, t]
    dis = jnp.dot(x2, bmat_ref[D], preferred_element_type=jnp.float32)
    for d in range(D):
        dis = dis + jnp.dot(planes[d], bmat_ref[d],
                            preferred_element_type=jnp.float32)

    col = lax.broadcasted_iota(jnp.int32, dis.shape, 1)
    dis = jnp.where(col < w_valid, dis, jnp.inf)     # mask padded positions
    dmin = qq_ref[0] + jnp.min(dis, axis=1, keepdims=True)   # (TN, 1)

    dmin_ref[...] = dmin
    y_ref[...] = dmin * w_ref[...] + b_ref[...]


def _band_matrix(qneg2, L, M, w_pad):
    """Banded Toeplitz weight ((D+1), L, w_pad): rows d<D hold -2*Q taps, row D ones."""
    l_idx = jnp.arange(L)[:, None]                   # (L, 1)
    j_idx = jnp.arange(w_pad)[None, :]               # (1, w_pad)
    t = l_idx - j_idx                                 # tap index for (l, j)
    band = (t >= 0) & (t < M) & (j_idx < (L - M + 1))
    t_c = jnp.clip(t, 0, M - 1)
    q_rows = jnp.where(band[None], qneg2[:, t_c], 0.0)        # (D, L, w_pad)
    ones_row = jnp.where(band, 1.0, 0.0)[None]                # (1, L, w_pad)
    return jnp.concatenate([q_rows, ones_row], axis=0).astype(jnp.float32)


def shapelet_forward(X, query, w_cls, b_cls, label, *, block_n=None):
    """X: (N, D, L) f32 (conv1d NCW layout); query: (1, D, M) or (D, M);
    w_cls: (2, 1) CLS weight; b_cls: (2,) CLS bias; label: (N,) int.
    Returns (Y: (N, 2) f32, meadis: scalar f32)."""
    X = jnp.asarray(X, jnp.float32)
    N, D, L = X.shape
    q = jnp.asarray(query, jnp.float32)
    if q.ndim == 3:
        q = q.reshape(q.shape[-2], q.shape[-1])      # (D, M)
    M = q.shape[1]
    W = L - M + 1

    # Hoisted shapelet constants (no per-grid-step scalar recompute).
    qq = jnp.sum(q * q).reshape(1)                   # (1,) f32
    q2 = 2.0 * q                                     # (D, M) f32

    # ---- per-generation VMEM sizing --------------------------------------
    try:
        vmem_cap = int(pltpu.get_tpu_info().vmem_capacity_bytes)
    except Exception:                                 # pragma: no cover
        vmem_cap = 64 << 20                           # conservative (v7x-sized)
    x_budget = (12 << 20) if vmem_cap > (64 << 20) else (6 << 20)

    lane_pad_L = _round_up(L, 128)
    row_bytes = D * lane_pad_L * 4                    # padded VMEM bytes per row

    # MXU gate: only worth it for non-toy shapelets with lane-dense W.
    w_pad = _round_up(W, 128)
    bmat_bytes = (D + 1) * L * w_pad * 4
    use_mxu = (M * D >= 32) and (W >= 128) and (2 * bmat_bytes <= (16 << 20))
    # TODO(synk): very long series (2*bmat_bytes > 16 MiB) would need the band
    # matrix K-tiled over L; those shapes currently fall back to the VALU path.

    resident = 2 * bmat_bytes if use_mxu else 0
    n8 = _round_up(max(N, 1), 8)
    if block_n is None:
        budget_left = max(x_budget - resident, 1 << 20)
        bn = max(8, (budget_left // (2 * row_bytes)) // 8 * 8)   # 2x double-buffer
        bn = min(bn, n8)
        if n8 >= 16:                 # keep >= 2 grid steps (v7x has 2 TensorCores)
            bn = min(bn, _round_up((n8 + 1) // 2, 8))
    else:
        bn = _round_up(int(block_n), 8)
    n_pad = _round_up(n8, bn)
    nblk = n_pad // bn

    # Layout fix: rows on sublanes, time on lanes.
    x_t = jnp.transpose(X, (1, 0, 2))                 # (D, N, L)
    x_t = jnp.pad(x_t, ((0, 0), (0, n_pad - N), (0, 0)))
    w_row = jnp.asarray(w_cls, jnp.float32).reshape(1, 2)      # (2,1) -> (1,2)
    b_row = jnp.asarray(b_cls, jnp.float32).reshape(1, 2)

    vmem_limit = int(min(vmem_cap * 3 // 4, 96 << 20))
    vmem_limit = max(vmem_limit, 2 * bn * row_bytes + resident + (8 << 20))

    out_shape = (jax.ShapeDtypeStruct((n_pad, 2), jnp.float32),
                 jax.ShapeDtypeStruct((n_pad, 1), jnp.float32))
    out_specs = (pl.BlockSpec((bn, 2), lambda i: (i, 0)),      # Y tile
                 pl.BlockSpec((bn, 1), lambda i: (i, 0)))      # dmin tile
    x_spec = pl.BlockSpec((D, bn, L), lambda i: (0, i, 0))
    smem_spec = pl.BlockSpec(memory_space=pltpu.MemorySpace.SMEM)
    cls_spec = pl.BlockSpec((1, 2), lambda i: (0, 0))
    cparams = pltpu.CompilerParams(dimension_semantics=("parallel",),
                                   vmem_limit_bytes=vmem_limit)

    if use_mxu:
        bmat = _band_matrix(-q2, L, M, w_pad)                  # -2*Q bands + ones
        kern = functools.partial(_mxu_kernel, w_valid=W)
        y_pad, dmin_pad = pl.pallas_call(
            kern,
            out_shape=out_shape,
            grid=(nblk,),
            in_specs=[x_spec,
                      pl.BlockSpec((D + 1, L, w_pad), lambda i: (0, 0, 0)),
                      smem_spec, cls_spec, cls_spec],
            out_specs=out_specs,
            compiler_params=cparams,
        )(x_t, bmat, qq, w_row, b_row)
    else:
        chunk = _choose_chunk(bn, D, L)
        kern = functools.partial(_valu_kernel, chunk=chunk)
        y_pad, dmin_pad = pl.pallas_call(
            kern,
            out_shape=out_shape,
            grid=(nblk,),
            in_specs=[x_spec, smem_spec, smem_spec, cls_spec, cls_spec],
            out_specs=out_specs,
            compiler_params=cparams,
        )(x_t, q2, qq, w_row, b_row)

    y = y_pad[:N]
    dmin = dmin_pad[:N, 0]

    # meadis epilogue in XLA (O(N)); matches torch (mean over empty class -> nan).
    lbl = jnp.asarray(label)
    pos = (lbl == 1).astype(jnp.float32)
    neg = (lbl == 0).astype(jnp.float32)
    meadis = (jnp.sum(dmin * pos) / jnp.sum(pos)
              - jnp.sum(dmin * neg) / jnp.sum(neg))
    return y, meadis


def ref_forward(X, Q, Wc, bc, label):
    """Pure-JAX reference mirroring the PyTorch module (for verification)."""
    N, D, L = X.shape
    M = Q.shape[1]
    W = L - M + 1
    windows = jnp.stack([X[:, :, t:t + W] for t in range(M)], axis=-1)  # (N,D,W,M)
    QQ = jnp.sum(Q * Q)
    XX = jnp.sum(windows * windows, axis=(1, 3))
    QX = jnp.einsum('ndwm,dm->nw', windows, Q,
                    precision=lax.Precision.HIGHEST)
    DIS = QQ + XX - 2.0 * QX
    dmin = jnp.min(DIS, axis=1, keepdims=True)
    Y = dmin @ Wc.T + bc
    meadis = jnp.mean(dmin[label == 1]) - jnp.mean(dmin[label == 0])
    return Y, meadis


if __name__ == "__main__":
    key = jax.random.PRNGKey(0)

    # ---- small config (module default scale): exercises the VALU path ----
    m, d = 8, 4
    N, L = 8, 32
    k1, k2, k3, k4, key = jax.random.split(key, 5)
    X = jax.random.normal(k1, (N, d, L), dtype=jnp.float32)
    query = jax.random.normal(k2, (1, d, m), dtype=jnp.float32)   # nn.Parameter
    w_cls = jax.random.normal(k3, (2, 1), dtype=jnp.float32) * 0.5
    b_cls = jax.random.normal(k4, (2,), dtype=jnp.float32) * 0.1
    label = jnp.array([0, 1, 0, 1, 1, 0, 1, 0], dtype=jnp.int32)

    y, meadis = shapelet_forward(X, query, w_cls, b_cls, label)
    y = jax.block_until_ready(y)
    meadis = jax.block_until_ready(meadis)
    y_ref, meadis_ref = ref_forward(X, query[0], w_cls, b_cls, label)
    assert jnp.allclose(y, y_ref, atol=2e-3, rtol=2e-3), (y, y_ref)
    assert jnp.allclose(meadis, meadis_ref, atol=2e-3, rtol=2e-3), (meadis, meadis_ref)

    # ---- larger config: exercises the MXU (banded-Toeplitz matmul) path ---
    m2, d2 = 16, 8
    N2, L2 = 64, 256
    k1, k2, k3, k4 = jax.random.split(key, 4)
    X2 = jax.random.normal(k1, (N2, d2, L2), dtype=jnp.float32)
    query2 = jax.random.normal(k2, (1, d2, m2), dtype=jnp.float32)
    w2 = jax.random.normal(k3, (2, 1), dtype=jnp.float32) * 0.5
    b2 = jax.random.normal(k4, (2,), dtype=jnp.float32) * 0.1
    label2 = (jnp.arange(N2) % 2).astype(jnp.int32)

    y2, meadis2 = shapelet_forward(X2, query2, w2, b2, label2)
    y2 = jax.block_until_ready(y2)
    meadis2 = jax.block_until_ready(meadis2)
    y2_ref, meadis2_ref = ref_forward(X2, query2[0], w2, b2, label2)
    # looser tolerance: f32 MXU rounding on O(100) squared-distance values
    assert jnp.allclose(y2, y2_ref, atol=3e-1, rtol=2e-2), (y2, y2_ref)
    assert jnp.allclose(meadis2, meadis2_ref, atol=3e-1, rtol=2e-2), (meadis2, meadis2_ref)

    print("KERNEL_OK")
</pallas_src>

<mosaic_0001>
module attributes {stable_mosaic.version = 11 : i64} {
  func.func @_valu_kernel(%arg0: i32, %arg1: memref<4x8x32xf32, #tpu.memory_space<vmem>>, %arg2: memref<4x8xf32, #tpu.memory_space<smem>>, %arg3: memref<1xf32, #tpu.memory_space<smem>>, %arg4: memref<1x2xf32, #tpu.memory_space<vmem>>, %arg5: memref<1x2xf32, #tpu.memory_space<vmem>>, %arg6: memref<8x2xf32, #tpu.memory_space<vmem>>, %arg7: memref<8x1xf32, #tpu.memory_space<vmem>>) attributes {dimension_semantics = [#tpu.dimension_semantics<parallel>], iteration_bounds = array<i64: 1>, scalar_prefetch = 0 : i64, scratch_operands = 0 : i64, tpu.core_type = #tpu.core_type<tc>, window_params = [{transform_indices = @transform_0, window_bounds = array<i64: 4, 8, 32>}, {transform_indices = @transform_1, window_bounds = array<i64: 4, 8>}, {transform_indices = @transform_2, window_bounds = array<i64: 1>}, {pipeline_mode = #tpu.pipeline_mode<synchronous>, transform_indices = @transform_3, window_bounds = array<i64: 1, 2>}, {pipeline_mode = #tpu.pipeline_mode<synchronous>, transform_indices = @transform_4, window_bounds = array<i64: 1, 2>}, {transform_indices = @transform_5, window_bounds = array<i64: 8, 2>}, {transform_indices = @transform_6, window_bounds = array<i64: 8, 1>}]} {
    %c0 = arith.constant 0 : index
    %0 = memref.load %arg3[%c0] : memref<1xf32, #tpu.memory_space<smem>>
    %c0_0 = arith.constant 0 : index
    %c0_1 = arith.constant 0 : index
    %1 = memref.load %arg2[%c0_0, %c0_1] : memref<4x8xf32, #tpu.memory_space<smem>>
    %c0_2 = arith.constant 0 : index
    %c1 = arith.constant 1 : index
    %2 = memref.load %arg2[%c0_2, %c1] : memref<4x8xf32, #tpu.memory_space<smem>>
    %c0_3 = arith.constant 0 : index
    %c2 = arith.constant 2 : index
    %3 = memref.load %arg2[%c0_3, %c2] : memref<4x8xf32, #tpu.memory_space<smem>>
    %c0_4 = arith.constant 0 : index
    %c3 = arith.constant 3 : index
    %4 = memref.load %arg2[%c0_4, %c3] : memref<4x8xf32, #tpu.memory_space<smem>>
    %c0_5 = arith.constant 0 : index
    %c4 = arith.constant 4 : index
    %5 = memref.load %arg2[%c0_5, %c4] : memref<4x8xf32, #tpu.memory_space<smem>>
    %c0_6 = arith.constant 0 : index
    %c5 = arith.constant 5 : index
    %6 = memref.load %arg2[%c0_6, %c5] : memref<4x8xf32, #tpu.memory_space<smem>>
    %c0_7 = arith.constant 0 : index
    %c6 = arith.constant 6 : index
    %7 = memref.load %arg2[%c0_7, %c6] : memref<4x8xf32, #tpu.memory_space<smem>>
    %c0_8 = arith.constant 0 : index
    %c7 = arith.constant 7 : index
    %8 = memref.load %arg2[%c0_8, %c7] : memref<4x8xf32, #tpu.memory_space<smem>>
    %c1_9 = arith.constant 1 : index
    %c0_10 = arith.constant 0 : index
    %9 = memref.load %arg2[%c1_9, %c0_10] : memref<4x8xf32, #tpu.memory_space<smem>>
    %c1_11 = arith.constant 1 : index
    %c1_12 = arith.constant 1 : index
    %10 = memref.load %arg2[%c1_11, %c1_12] : memref<4x8xf32, #tpu.memory_space<smem>>
    %c1_13 = arith.constant 1 : index
    %c2_14 = arith.constant 2 : index
    %11 = memref.load %arg2[%c1_13, %c2_14] : memref<4x8xf32, #tpu.memory_space<smem>>
    %c1_15 = arith.constant 1 : index
    %c3_16 = arith.constant 3 : index
    %12 = memref.load %arg2[%c1_15, %c3_16] : memref<4x8xf32, #tpu.memory_space<smem>>
    %c1_17 = arith.constant 1 : index
    %c4_18 = arith.constant 4 : index
    %13 = memref.load %arg2[%c1_17, %c4_18] : memref<4x8xf32, #tpu.memory_space<smem>>
    %c1_19 = arith.constant 1 : index
    %c5_20 = arith.constant 5 : index
    %14 = memref.load %arg2[%c1_19, %c5_20] : memref<4x8xf32, #tpu.memory_space<smem>>
    %c1_21 = arith.constant 1 : index
    %c6_22 = arith.constant 6 : index
    %15 = memref.load %arg2[%c1_21, %c6_22] : memref<4x8xf32, #tpu.memory_space<smem>>
    %c1_23 = arith.constant 1 : index
    %c7_24 = arith.constant 7 : index
    %16 = memref.load %arg2[%c1_23, %c7_24] : memref<4x8xf32, #tpu.memory_space<smem>>
    %c2_25 = arith.constant 2 : index
    %c0_26 = arith.constant 0 : index
    %17 = memref.load %arg2[%c2_25, %c0_26] : memref<4x8xf32, #tpu.memory_space<smem>>
    %c2_27 = arith.constant 2 : index
    %c1_28 = arith.constant 1 : index
    %18 = memref.load %arg2[%c2_27, %c1_28] : memref<4x8xf32, #tpu.memory_space<smem>>
    %c2_29 = arith.constant 2 : index
    %c2_30 = arith.constant 2 : index
    %19 = memref.load %arg2[%c2_29, %c2_30] : memref<4x8xf32, #tpu.memory_space<smem>>
    %c2_31 = arith.constant 2 : index
    %c3_32 = arith.constant 3 : index
    %20 = memref.load %arg2[%c2_31, %c3_32] : memref<4x8xf32, #tpu.memory_space<smem>>
    %c2_33 = arith.constant 2 : index
    %c4_34 = arith.constant 4 : index
    %21 = memref.load %arg2[%c2_33, %c4_34] : memref<4x8xf32, #tpu.memory_space<smem>>
    %c2_35 = arith.constant 2 : index
    %c5_36 = arith.constant 5 : index
    %22 = memref.load %arg2[%c2_35, %c5_36] : memref<4x8xf32, #tpu.memory_space<smem>>
    %c2_37 = arith.constant 2 : index
    %c6_38 = arith.constant 6 : index
    %23 = memref.load %arg2[%c2_37, %c6_38] : memref<4x8xf32, #tpu.memory_space<smem>>
    %c2_39 = arith.constant 2 : index
    %c7_40 = arith.constant 7 : index
    %24 = memref.load %arg2[%c2_39, %c7_40] : memref<4x8xf32, #tpu.memory_space<smem>>
    %c3_41 = arith.constant 3 : index
    %c0_42 = arith.constant 0 : index
    %25 = memref.load %arg2[%c3_41, %c0_42] : memref<4x8xf32, #tpu.memory_space<smem>>
    %c3_43 = arith.constant 3 : index
    %c1_44 = arith.constant 1 : index
    %26 = memref.load %arg2[%c3_43, %c1_44] : memref<4x8xf32, #tpu.memory_space<smem>>
    %c3_45 = arith.constant 3 : index
    %c2_46 = arith.constant 2 : index
    %27 = memref.load %arg2[%c3_45, %c2_46] : memref<4x8xf32, #tpu.memory_space<smem>>
    %c3_47 = arith.constant 3 : index
    %c3_48 = arith.constant 3 : index
    %28 = memref.load %arg2[%c3_47, %c3_48] : memref<4x8xf32, #tpu.memory_space<smem>>
    %c3_49 = arith.constant 3 : index
    %c4_50 = arith.constant 4 : index
    %29 = memref.load %arg2[%c3_49, %c4_50] : memref<4x8xf32, #tpu.memory_space<smem>>
    %c3_51 = arith.constant 3 : index
    %c5_52 = arith.constant 5 : index
    %30 = memref.load %arg2[%c3_51, %c5_52] : memref<4x8xf32, #tpu.memory_space<smem>>
    %c3_53 = arith.constant 3 : index
    %c6_54 = arith.constant 6 : index
    %31 = memref.load %arg2[%c3_53, %c6_54] : memref<4x8xf32, #tpu.memory_space<smem>>
    %c3_55 = arith.constant 3 : index
    %c7_56 = arith.constant 7 : index
    %32 = memref.load %arg2[%c3_55, %c7_56] : memref<4x8xf32, #tpu.memory_space<smem>>
    %c0_57 = arith.constant 0 : index
    %c0_58 = arith.constant 0 : index
    %33 = vector.load %arg4[%c0_57, %c0_58] : memref<1x2xf32, #tpu.memory_space<vmem>>, vector<1x2xf32>
    %c0_59 = arith.constant 0 : index
    %c0_60 = arith.constant 0 : index
    %34 = vector.load %arg5[%c0_59, %c0_60] : memref<1x2xf32, #tpu.memory_space<vmem>>, vector<1x2xf32>
    %35 = tpu.iota {dimensions = array<i32: 1>} : vector<8x32xi32>
    %c25_i32 = arith.constant 25 : i32
    %36 = vector.broadcast %c25_i32 : i32 to vector<8x32xi32>
    %37 = arith.cmpi slt, %35, %36 : vector<8x32xi32>
    %c0_i32 = arith.constant 0 : i32
    %c8_i32 = arith.constant 8 : i32
    %38 = arith.muli %c0_i32, %c8_i32 : i32
    %39 = tpu.assume_multiple %38, 8 : i32
    %c0_61 = arith.constant 0 : index
    %40 = arith.index_cast %39 : i32 to index
    %c0_62 = arith.constant 0 : index
    %41 = vector.load %arg1[%c0_61, %40, %c0_62] : memref<4x8x32xf32, #tpu.memory_space<vmem>>, vector<1x8x32xf32>
    %42 = vector.shape_cast %41 : vector<1x8x32xf32> to vector<8x32xf32>
    %c1_63 = arith.constant 1 : index
    %43 = arith.index_cast %39 : i32 to index
    %c0_64 = arith.constant 0 : index
    %44 = vector.load %arg1[%c1_63, %43, %c0_64] : memref<4x8x32xf32, #tpu.memory_space<vmem>>, vector<1x8x32xf32>
    %45 = vector.shape_cast %44 : vector<1x8x32xf32> to vector<8x32xf32>
    %c2_65 = arith.constant 2 : index
    %46 = arith.index_cast %39 : i32 to index
    %c0_66 = arith.constant 0 : index
    %47 = vector.load %arg1[%c2_65, %46, %c0_66] : memref<4x8x32xf32, #tpu.memory_space<vmem>>, vector<1x8x32xf32>
    %48 = vector.shape_cast %47 : vector<1x8x32xf32> to vector<8x32xf32>
    %c3_67 = arith.constant 3 : index
    %49 = arith.index_cast %39 : i32 to index
    %c0_68 = arith.constant 0 : index
    %50 = vector.load %arg1[%c3_67, %49, %c0_68] : memref<4x8x32xf32, #tpu.memory_space<vmem>>, vector<1x8x32xf32>
    %51 = vector.shape_cast %50 : vector<1x8x32xf32> to vector<8x32xf32>
    %52 = arith.mulf %42, %42 : vector<8x32xf32>
    %53 = arith.mulf %45, %45 : vector<8x32xf32>
    %54 = arith.addf %52, %53 : vector<8x32xf32>
    %55 = arith.mulf %48, %48 : vector<8x32xf32>
    %56 = arith.addf %54, %55 : vector<8x32xf32>
    %57 = arith.mulf %51, %51 : vector<8x32xf32>
    %58 = arith.addf %56, %57 : vector<8x32xf32>
    %59 = vector.broadcast %1 : f32 to vector<8x32xf32>
    %60 = arith.mulf %42, %59 : vector<8x32xf32>
    %61 = vector.broadcast %9 : f32 to vector<8x32xf32>
    %62 = arith.mulf %45, %61 : vector<8x32xf32>
    %63 = arith.addf %60, %62 : vector<8x32xf32>
    %64 = vector.broadcast %17 : f32 to vector<8x32xf32>
    %65 = arith.mulf %48, %64 : vector<8x32xf32>
    %66 = arith.addf %63, %65 : vector<8x32xf32>
    %67 = vector.broadcast %25 : f32 to vector<8x32xf32>
    %68 = arith.mulf %51, %67 : vector<8x32xf32>
    %69 = arith.addf %66, %68 : vector<8x32xf32>
    %70 = arith.subf %58, %69 : vector<8x32xf32>
    %71 = vector.broadcast %2 : f32 to vector<8x32xf32>
    %72 = arith.mulf %42, %71 : vector<8x32xf32>
    %73 = vector.broadcast %10 : f32 to vector<8x32xf32>
    %74 = arith.mulf %45, %73 : vector<8x32xf32>
    %75 = arith.addf %72, %74 : vector<8x32xf32>
    %76 = vector.broadcast %18 : f32 to vector<8x32xf32>
    %77 = arith.mulf %48, %76 : vector<8x32xf32>
    %78 = arith.addf %75, %77 : vector<8x32xf32>
    %79 = vector.broadcast %26 : f32 to vector<8x32xf32>
    %80 = arith.mulf %51, %79 : vector<8x32xf32>
    %81 = arith.addf %78, %80 : vector<8x32xf32>
    %82 = arith.subf %58, %81 : vector<8x32xf32>
    %c31_i32 = arith.constant 31 : i32
    %83 = tpu.dynamic_rotate %82 by %c31_i32 dim 1 : vector<8x32xf32>, i32 -> vector<8x32xf32>
    %84 = arith.addf %70, %83 : vector<8x32xf32>
    %85 = vector.broadcast %3 : f32 to vector<8x32xf32>
    %86 = arith.mulf %42, %85 : vector<8x32xf32>
    %87 = vector.broadcast %11 : f32 to vector<8x32xf32>
    %88 = arith.mulf %45, %87 : vector<8x32xf32>
    %89 = arith.addf %86, %88 : vector<8x32xf32>
    %90 = vector.broadcast %19 : f32 to vector<8x32xf32>
    %91 = arith.mulf %48, %90 : vector<8x32xf32>
    %92 = arith.addf %89, %91 : vector<8x32xf32>
    %93 = vector.broadcast %27 : f32 to vector<8x32xf32>
    %94 = arith.mulf %51, %93 : vector<8x32xf32>
    %95 = arith.addf %92, %94 : vector<8x32xf32>
    %96 = arith.subf %58, %95 : vector<8x32xf32>
    %c30_i32 = arith.constant 30 : i32
    %97 = tpu.dynamic_rotate %96 by %c30_i32 dim 1 : vector<8x32xf32>, i32 -> vector<8x32xf32>
    %98 = arith.addf %84, %97 : vector<8x32xf32>
    %99 = vector.broadcast %4 : f32 to vector<8x32xf32>
    %100 = arith.mulf %42, %99 : vector<8x32xf32>
    %101 = vector.broadcast %12 : f32 to vector<8x32xf32>
    %102 = arith.mulf %45, %101 : vector<8x32xf32>
    %103 = arith.addf %100, %102 : vector<8x32xf32>
    %104 = vector.broadcast %20 : f32 to vector<8x32xf32>
    %105 = arith.mulf %48, %104 : vector<8x32xf32>
    %106 = arith.addf %103, %105 : vector<8x32xf32>
    %107 = vector.broadcast %28 : f32 to vector<8x32xf32>
    %108 = arith.mulf %51, %107 : vector<8x32xf32>
    %109 = arith.addf %106, %108 : vector<8x32xf32>
    %110 = arith.subf %58, %109 : vector<8x32xf32>
    %c29_i32 = arith.constant 29 : i32
    %111 = tpu.dynamic_rotate %110 by %c29_i32 dim 1 : vector<8x32xf32>, i32 -> vector<8x32xf32>
    %112 = arith.addf %98, %111 : vector<8x32xf32>
    %113 = vector.broadcast %5 : f32 to vector<8x32xf32>
    %114 = arith.mulf %42, %113 : vector<8x32xf32>
    %115 = vector.broadcast %13 : f32 to vector<8x32xf32>
    %116 = arith.mulf %45, %115 : vector<8x32xf32>
    %117 = arith.addf %114, %116 : vector<8x32xf32>
    %118 = vector.broadcast %21 : f32 to vector<8x32xf32>
    %119 = arith.mulf %48, %118 : vector<8x32xf32>
    %120 = arith.addf %117, %119 : vector<8x32xf32>
    %121 = vector.broadcast %29 : f32 to vector<8x32xf32>
    %122 = arith.mulf %51, %121 : vector<8x32xf32>
    %123 = arith.addf %120, %122 : vector<8x32xf32>
    %124 = arith.subf %58, %123 : vector<8x32xf32>
    %c28_i32 = arith.constant 28 : i32
    %125 = tpu.dynamic_rotate %124 by %c28_i32 dim 1 : vector<8x32xf32>, i32 -> vector<8x32xf32>
    %126 = arith.addf %112, %125 : vector<8x32xf32>
    %127 = vector.broadcast %6 : f32 to vector<8x32xf32>
    %128 = arith.mulf %42, %127 : vector<8x32xf32>
    %129 = vector.broadcast %14 : f32 to vector<8x32xf32>
    %130 = arith.mulf %45, %129 : vector<8x32xf32>
    %131 = arith.addf %128, %130 : vector<8x32xf32>
    %132 = vector.broadcast %22 : f32 to vector<8x32xf32>
    %133 = arith.mulf %48, %132 : vector<8x32xf32>
    %134 = arith.addf %131, %133 : vector<8x32xf32>
    %135 = vector.broadcast %30 : f32 to vector<8x32xf32>
    %136 = arith.mulf %51, %135 : vector<8x32xf32>
    %137 = arith.addf %134, %136 : vector<8x32xf32>
    %138 = arith.subf %58, %137 : vector<8x32xf32>
    %c27_i32 = arith.constant 27 : i32
    %139 = tpu.dynamic_rotate %138 by %c27_i32 dim 1 : vector<8x32xf32>, i32 -> vector<8x32xf32>
    %140 = arith.addf %126, %139 : vector<8x32xf32>
    %141 = vector.broadcast %7 : f32 to vector<8x32xf32>
    %142 = arith.mulf %42, %141 : vector<8x32xf32>
    %143 = vector.broadcast %15 : f32 to vector<8x32xf32>
    %144 = arith.mulf %45, %143 : vector<8x32xf32>
    %145 = arith.addf %142, %144 : vector<8x32xf32>
    %146 = vector.broadcast %23 : f32 to vector<8x32xf32>
    %147 = arith.mulf %48, %146 : vector<8x32xf32>
    %148 = arith.addf %145, %147 : vector<8x32xf32>
    %149 = vector.broadcast %31 : f32 to vector<8x32xf32>
    %150 = arith.mulf %51, %149 : vector<8x32xf32>
    %151 = arith.addf %148, %150 : vector<8x32xf32>
    %152 = arith.subf %58, %151 : vector<8x32xf32>
    %c26_i32 = arith.constant 26 : i32
    %153 = tpu.dynamic_rotate %152 by %c26_i32 dim 1 : vector<8x32xf32>, i32 -> vector<8x32xf32>
    %154 = arith.addf %140, %153 : vector<8x32xf32>
    %155 = vector.broadcast %8 : f32 to vector<8x32xf32>
    %156 = arith.mulf %42, %155 : vector<8x32xf32>
    %157 = vector.broadcast %16 : f32 to vector<8x32xf32>
    %158 = arith.mulf %45, %157 : vector<8x32xf32>
    %159 = arith.addf %156, %158 : vector<8x32xf32>
    %160 = vector.broadcast %24 : f32 to vector<8x32xf32>
    %161 = arith.mulf %48, %160 : vector<8x32xf32>
    %162 = arith.addf %159, %161 : vector<8x32xf32>
    %163 = vector.broadcast %32 : f32 to vector<8x32xf32>
    %164 = arith.mulf %51, %163 : vector<8x32xf32>
    %165 = arith.addf %162, %164 : vector<8x32xf32>
    %166 = arith.subf %58, %165 : vector<8x32xf32>
    %c25_i32_69 = arith.constant 25 : i32
    %167 = tpu.dynamic_rotate %166 by %c25_i32_69 dim 1 : vector<8x32xf32>, i32 -> vector<8x32xf32>
    %168 = arith.addf %154, %167 : vector<8x32xf32>
    %cst = arith.constant 0x7F800000 : f32
    %169 = vector.broadcast %cst : f32 to vector<8x32xf32>
    %170 = arith.select %37, %168, %169 : vector<8x32xi1>, vector<8x32xf32>
    %cst_70 = arith.constant dense<0x7F800000> : vector<8xf32>
    %171 = vector.multi_reduction <minimumf>, %170, %cst_70 [1] : vector<8x32xf32> to vector<8xf32>
    %172 = vector.shape_cast %171 : vector<8xf32> to vector<8x1xf32>
    %173 = vector.broadcast %0 : f32 to vector<8x1xf32>
    %174 = arith.addf %173, %172 : vector<8x1xf32>
    %175 = arith.index_cast %39 : i32 to index
    %c0_71 = arith.constant 0 : index
    %176 = vector.load %arg7[%175, %c0_71] : memref<8x1xf32, #tpu.memory_space<vmem>>, vector<8x1xf32>
    tpu.vector_store %arg7[%175, %c0_71], %174 {strides = array<i32>} : memref<8x1xf32, #tpu.memory_space<vmem>>, vector<8x1xf32>,
    %177 = vector.broadcast %174 : vector<8x1xf32> to vector<8x2xf32>
    %178 = vector.broadcast %33 : vector<1x2xf32> to vector<8x2xf32>
    %179 = arith.mulf %177, %178 : vector<8x2xf32>
    %180 = vector.broadcast %34 : vector<1x2xf32> to vector<8x2xf32>
    %181 = arith.addf %179, %180 : vector<8x2xf32>
    %182 = arith.index_cast %39 : i32 to index
    %c0_72 = arith.constant 0 : index
    %183 = vector.load %arg6[%182, %c0_72] : memref<8x2xf32, #tpu.memory_space<vmem>>, vector<8x2xf32>
    tpu.vector_store %arg6[%182, %c0_72], %181 {strides = array<i32>} : memref<8x2xf32, #tpu.memory_space<vmem>>, vector<8x2xf32>,
    %c1_i32 = arith.constant 1 : i32
    return
  }
  func.func @transform_0(%arg0: i32) -> (i32, i32, i32) {
    %c0_i32 = arith.constant 0 : i32
    %c0_i32_0 = arith.constant 0 : i32
    %c0_i32_1 = arith.constant 0 : i32
    return %c0_i32, %arg0, %c0_i32_0 : i32, i32, i32
  }
  func.func @transform_1(%arg0: i32) -> (i32, i32) {
    %c0_i32 = arith.constant 0 : i32
    %c0_i32_0 = arith.constant 0 : i32
    %c0_i32_1 = arith.constant 0 : i32
    return %c0_i32, %c0_i32_0 : i32, i32
  }
  func.func @transform_2(%arg0: i32) -> i32 {
    %c0_i32 = arith.constant 0 : i32
    %c0_i32_0 = arith.constant 0 : i32
    return %c0_i32 : i32
  }
  func.func @transform_3(%arg0: i32) -> (i32, i32) {
    %c0_i32 = arith.constant 0 : i32
    %c0_i32_0 = arith.constant 0 : i32
    %c0_i32_1 = arith.constant 0 : i32
    return %c0_i32, %c0_i32_0 : i32, i32
  }
  func.func @transform_4(%arg0: i32) -> (i32, i32) {
    %c0_i32 = arith.constant 0 : i32
    %c0_i32_0 = arith.constant 0 : i32
    %c0_i32_1 = arith.constant 0 : i32
    return %c0_i32, %c0_i32_0 : i32, i32
  }
  func.func @transform_5(%arg0: i32) -> (i32, i32) {
    %c0_i32 = arith.constant 0 : i32
    %c0_i32_0 = arith.constant 0 : i32
    return %arg0, %c0_i32 : i32, i32
  }
  func.func @transform_6(%arg0: i32) -> (i32, i32) {
    %c0_i32 = arith.constant 0 : i32
    %c0_i32_0 = arith.constant 0 : i32
    return %arg0, %c0_i32 : i32, i32
  }
}

</mosaic_0001>

<bundles_post_ra>
// kernel: tpu_custom_call.1
= control target key start
LH: loop header
LB: loop body
LE: loop exit
PB: predicated region body
PF: predicated region fallthrough
CT: control target
= control target key end

     0   :  { %13 = vsyncpa [#allocation4], 0  ;;  %s567_s0 = inlined_call_operand.hbm [shape: f32[4,8,32], index: 0, kind: input, shape index: {}]   ;;  %s568_s1 = inlined_call_operand.hbm [shape: f32[4,8], index: 1, kind: input, shape index: {}]   ;;  %s569_s2 = inlined_call_operand.<no memory space> [shape: f32[1], index: 2, kind: input, shape index: {}]   ;;  %s570_s3 = inlined_call_operand.vmem [shape: f32[1,2], index: 3, kind: input, shape index: {}]   ;;  %s571_s4 = inlined_call_operand.vmem [shape: f32[1,2], index: 4, kind: input, shape index: {}]   ;;  %s572_s5 = inlined_call_operand.vmem [shape: f32[8,2], index: 5, kind: output, shape index: {0}]   ;;  %s573_s6 = inlined_call_operand.vmem [shape: f32[8,1], index: 6, kind: output, shape index: {1}]  }
   0x1   :  { %s19_s23 = sshll.u32 %s567_s0, 4  ;;  %s20_s23 = int_to_ptr.hbm [resolvable:$true] %s19_s23 }
   0x2   :  { %14 = vsyncpa [#allocation5], 0  ;;  %s398_s24 = smov [#allocation3]   ;;  %s33_s28 = sshll.u32 %s568_s1, 4  ;;  %s34_s28 = int_to_ptr.hbm [resolvable:$true] %s33_s28 }
   0x3   :  { %s21_s25 = sshll.u32 %s398_s24, 4  ;;  %s399_s29 = smov 128   ;;  %s22_s25 = int_to_ptr.vmem [resolvable:$true] %s21_s25 }
   0x4   :  { %s400_s30 = smov 8   ;;  %s401_s7 = smov [#allocation6]  }
   0x5   :  { %27 = dma.hbm_to_vmem [thread:$0]  %s20_s23, 512, %s22_s25, [#allocation4], %s399_s29, %s399_s29, %s400_s30  }
   0x6   :  { %36 = dma.hbm_to_smem %s34_s28, 64, %s401_s7, [#allocation5]  }
   0x7   :  { %394 = dma.done.wait [#allocation4], 512  }
   0x8   :  { %395 = vsyncadd [#allocation4], 4294966784 }
   0x9   :  { %396 = dma.done.wait [#allocation5], 64  }
   0xa   :  { %397 = vsyncadd [#allocation5], 4294967232 }
   0xb   :  { %51 = sfence }
   0xc   :  { %s315_s0 = sld [smem:[#allocation6 + $0x3]]  ;;  %v451_v0 = vld [vmem:[#allocation3] sm:$0xff]  ;;  %v453_v1 = vld [vmem:[#allocation3 + $0x8] sm:$0xff]  ;;  %v455_v2 = vld [vmem:[#allocation3 + $0x10] sm:$0xff]  ;;  %s402_s24 = smov 32   ;;  %vm131_vm0 = vcmask 1047808  }
   0xd   :  { %s323_s8 = sld [smem:[#allocation6 + $0x83]]  ;;  %v100_v3 = vmul.f32 %v451_v0, %v451_v0  ;;  %v101_v4 = vmul.f32 %v453_v1, %v453_v1  ;;  %v103_v6 = vmul.f32 %v455_v2, %v455_v2  ;;  %v463_v7 = vld [vmem:[#allocation3 + $0x18] sm:$0xff]  ;;  %vm282_vm2 = vcmask 261120  }
   0xe   :  { %s331_s1 = sld [smem:[#allocation6 + $0x103]]  ;;  %v105_v12 = vmul.f32 %v463_v7, %v463_v7  ;;  %vm288_vm3 = vcmask 7168   ;;  %vm298_vm4 = vcmask 15360  }
   0xf   :  { %s339_s9 = sld [smem:[#allocation6 + $0x183]]  ;;  %v102_v5 = vadd.f32 %v101_v4, %v100_v3 }
  0x10   :  { %s313_s10 = sld [smem:[#allocation6 + $0x1]] }
  0x11   :  { %s321_s11 = sld [smem:[#allocation6 + $0x81]]  ;;  %v104_v11 = vadd.f32 %v103_v6, %v102_v5 }
  0x12   :  { %v166_v8 = vstv %s315_s0  ;;  %s329_s12 = sld [smem:[#allocation6 + $0x101]] }
  0x13   :  { %v167_v9 = vmul.f32 %v166_v8, %v451_v0  ;;  %v168_v10 = vstv %s323_s8  ;;  %s337_s13 = sld [smem:[#allocation6 + $0x181]]  ;;  %v472_v22 = vadd.f32 %v105_v12, %v104_v11 }
  0x14   :  { %v169_v13 = vmul.f32 %v168_v10, %v453_v1  ;;  %v171_v14 = vstv %s331_s1  ;;  %s314_s14 = sld [smem:[#allocation6 + $0x2]] }
  0x15   :  { %v172_v15 = vmul.f32 %v171_v14, %v455_v2  ;;  %v174_v16 = vstv %s339_s9  ;;  %s322_s15 = sld [smem:[#allocation6 + $0x82]]  ;;  %s403_s9 = smov 126  }
  0x16   :  { %v170_v17 = vadd.f32 %v169_v13, %v167_v9  ;;  %v175_v18 = vmul.f32 %v174_v16, %v463_v7  ;;  %v119_v19 = vstv %s313_s10  ;;  %s330_s16 = sld [smem:[#allocation6 + $0x102]]  ;;  %s404_s10 = smov 123  }
  0x17   :  { %v120_v20 = vmul.f32 %v119_v19, %v451_v0  ;;  %v121_v21 = vstv %s321_s11  ;;  %s338_s17 = sld [smem:[#allocation6 + $0x182]]  ;;  %s405_s11 = smov 125  }
  0x18   :  { %v173_v23 = vadd.f32 %v172_v15, %v170_v17  ;;  %v122_v24 = vmul.f32 %v121_v21, %v453_v1  ;;  %v124_v25 = vstv %s329_s12  ;;  %s317_s18 = sld [smem:[#allocation6 + $0x5]]  ;;  %s406_s12 = smov 127  }
  0x19   :  { %v125_v26 = vmul.f32 %v124_v25, %v455_v2  ;;  %v127_v27 = vstv %s337_s13  ;;  %s325_s19 = sld [smem:[#allocation6 + $0x85]]  ;;  %s407_s13 = smov 122  }
  0x1a   :  { %v176_v28 = vadd.f32 %v175_v18, %v173_v23  ;;  %v123_v29 = vadd.f32 %v122_v24, %v120_v20  ;;  %v128_v30 = vmul.f32 %v127_v27, %v463_v7  ;;  %v143_v31 = vstv %s314_s14  ;;  %s333_s20 = sld [smem:[#allocation6 + $0x105]]  ;;  %s408_s14 = smov 124  }
  0x1b   :  { %v144_v32 = vmul.f32 %v143_v31, %v451_v0  ;;  %v145_v33 = vstv %s322_s15  ;;  %s341_s21 = sld [smem:[#allocation6 + $0x185]]  ;;  %s409_s15 = smov 121  }
  0x1c   :  { %v479_v34 = vsub.f32 %v472_v22, %v176_v28  ;;  %v126_v35 = vadd.f32 %v125_v26, %v123_v29  ;;  %v146_v36 = vmul.f32 %v145_v33, %v453_v1  ;;  %v148_v37 = vstv %s330_s16  ;;  %s316_s22 = sld [smem:[#allocation6 + $0x4]] }
  0x1d   :  { %v149_v38 = vmul.f32 %v148_v37, %v455_v2  ;;  %v151_v39 = vstv %s338_s17  ;;  %s324_s23 = sld [smem:[#allocation6 + $0x84]] }
  0x1e   :  { %178 = vrot.lane.b32.xlu1 %v479_v34, %s402_s24  ;;  %v129_v40 = vadd.f32 %v128_v30, %v126_v35  ;;  %v147_v41 = vadd.f32 %v146_v36, %v144_v32  ;;  %v152_v42 = vmul.f32 %v151_v39, %v463_v7  ;;  %v212_v43 = vstv %s317_s18  ;;  %s332_s25 = sld [smem:[#allocation6 + $0x104]] }
  0x1f   :  { %v213_v44 = vmul.f32 %v212_v43, %v451_v0  ;;  %v214_v45 = vstv %s325_s19  ;;  %s340_s26 = sld [smem:[#allocation6 + $0x184]] }
  0x20   :  { %v488_v46 = vsub.f32 %v472_v22, %v129_v40  ;;  %v150_v47 = vadd.f32 %v149_v38, %v147_v41  ;;  %v215_v48 = vmul.f32 %v214_v45, %v453_v1  ;;  %v217_v49 = vstv %s333_s20  ;;  %s318_s27 = sld [smem:[#allocation6 + $0x6]] }
  0x21   :  { %v218_v50 = vmul.f32 %v217_v49, %v455_v2  ;;  %v220_v51 = vstv %s341_s21  ;;  %s326_s28 = sld [smem:[#allocation6 + $0x86]] }
  0x22   :  { %132 = vrot.lane.b32.xlu0 %v488_v46, %s402_s24  ;;  %v153_v52 = vadd.f32 %v152_v42, %v150_v47  ;;  %v216_v53 = vadd.f32 %v215_v48, %v213_v44  ;;  %v221_v54 = vmul.f32 %v220_v51, %v463_v7  ;;  %v189_v55 = vstv %s316_s22  ;;  %s334_s29 = sld [smem:[#allocation6 + $0x106]] }
  0x23   :  { %v190_v56 = vmul.f32 %v189_v55, %v451_v0  ;;  %v191_v57 = vstv %s324_s23  ;;  %s342_s30 = sld [smem:[#allocation6 + $0x186]] }
  0x24   :  { %v219_v58 = vadd.f32 %v218_v50, %v216_v53  ;;  %v192_v59 = vmul.f32 %v191_v57, %v453_v1  ;;  %v194_v60 = vstv %s332_s25  ;;  %s319_s7 = sld [smem:[#allocation6 + $0x7]]  ;;  %v498_v61 = vsub.f32 %v472_v22, %v153_v52 }
  0x25   :  { %v195_v62 = vmul.f32 %v194_v60, %v455_v2  ;;  %v197_v63 = vstv %s340_s26  ;;  %s327_s0 = sld [smem:[#allocation6 + $0x87]] }
  0x26   :  { %v222_v3 = vadd.f32 %v221_v54, %v219_v58  ;;  %v193_v4 = vadd.f32 %v192_v59, %v190_v56  ;;  %v198_v5 = vmul.f32 %v197_v63, %v463_v7  ;;  %v235_v6 = vstv %s318_s27  ;;  %s335_s8 = sld [smem:[#allocation6 + $0x107]] }
  0x27   :  { %v236_v8 = vmul.f32 %v235_v6, %v451_v0  ;;  %v237_v9 = vstv %s326_s28  ;;  %s343_s1 = sld [smem:[#allocation6 + $0x187]] }
  0x28   :  { %v223_v10 = vsub.f32 %v472_v22, %v222_v3  ;;  %v196_v11 = vadd.f32 %v195_v62, %v193_v4  ;;  %v238_v12 = vmul.f32 %v237_v9, %v453_v1  ;;  %v240_v13 = vstv %s334_s29  ;;  %s320_s16 = sld [smem:[#allocation6 + $0x80]] }
  0x29   :  { %v241_v14 = vmul.f32 %v240_v13, %v455_v2  ;;  %v243_v15 = vstv %s342_s30  ;;  %s53_s17 = sld [smem:[#allocation6]] }
  0x2a   :  { %155 = vrot.lane.b32.xlu0 %v498_v61, %s402_s24  ;;  %224 = vrot.lane.b32.xlu2 %v223_v10, %s402_s24  ;;  %v199_v16 = vadd.f32 %v198_v5, %v196_v11  ;;  %v239_v17 = vadd.f32 %v238_v12, %v236_v8  ;;  %v244_v18 = vmul.f32 %v243_v15, %v463_v7  ;;  %v258_v19 = vstv %s319_s7  ;;  %s328_s18 = sld [smem:[#allocation6 + $0x100]] }
  0x2b   :  { %v259_v20 = vmul.f32 %v258_v19, %v451_v0  ;;  %v260_v21 = vstv %s327_s0  ;;  %s336_s19 = sld [smem:[#allocation6 + $0x180]] }
  0x2c   :  { %v200_v23 = vsub.f32 %v472_v22, %v199_v16  ;;  %v242_v24 = vadd.f32 %v241_v14, %v239_v17  ;;  %v261_v25 = vmul.f32 %v260_v21, %v453_v1  ;;  %v263_v26 = vstv %s335_s8 }
  0x2d   :  { %v264_v27 = vmul.f32 %v263_v26, %v455_v2  ;;  %v266_v28 = vstv %s343_s1 }
  0x2e   :  { %201 = vrot.lane.b32.xlu1 %v200_v23, %s402_s24  ;;  %v245_v29 = vadd.f32 %v244_v18, %v242_v24  ;;  %v262_v30 = vadd.f32 %v261_v25, %v259_v20  ;;  %v267_v31 = vmul.f32 %v266_v28, %v463_v7 }
  0x2f   :  { %v107_v4 = vstv %s53_s17 }
  0x30   :  { %v246_v32 = vsub.f32 %v472_v22, %v245_v29  ;;  %v265_v33 = vadd.f32 %v264_v27, %v262_v30  ;;  %v108_v6 = vmul.f32 %v107_v4, %v451_v0  ;;  %v112_v8 = vstv %s328_s18 }
  0x31   :  { %v113_v9 = vmul.f32 %v112_v8, %v455_v2  ;;  %v115_v11 = vstv %s336_s19 }
  0x32   :  { %247 = vrot.lane.b32.xlu2 %v246_v32, %s402_s24  ;;  %v268_v35 = vadd.f32 %v267_v31, %v265_v33  ;;  %v116_v12 = vmul.f32 %v115_v11, %v463_v7  ;;  %v356_v31 = vld [vmem:[%s570_s3] ss:$0 sm:$0xff] }
  0x33   :  { %v357_v33 = vld [vmem:[%s571_s4] ss:$0 sm:$0xff] }
  0x34   :  { %v269_v36 = vsub.f32 %v472_v22, %v268_v35 }
  0x36   :  { %270 = vrot.lane.b32.xlu0 %v269_v36, %s402_s24 }
  0x84   :  { %v225_v37 = vpop.permute.xlu2 %224 }
  0x85   :  { %v226_v49 = vsel %vm131_vm0, %v225_v37, %v223_v10 }
  0x8c   :  { %v248_v41 = vpop.permute.xlu2 %247 }
  0x8d   :  { %v249_v43 = vsel %vm131_vm0, %v248_v41, %v246_v32 }
  0x90   :  { %v179_v38 = vpop.permute.xlu1 %178 }
  0x91   :  { %v180_v39 = vsel %vm131_vm0, %v179_v38, %v479_v34 }
  0x92   :  { %181 = vrot.lane.b32.xlu0 %v180_v39, %s402_s24 }
  0x94   :  { %v133_v40 = vpop.permute.xlu0 %132 }
  0x95   :  { %v134_v42 = vsel %vm131_vm0, %v133_v40, %v488_v46 }
  0x96   :  { %135 = vrot.lane.b32.xlu1 %v134_v42, %s402_s24 }
  0x9a   :  { %250 = vrot.lane.b32.xlu0 %v249_v43, %s402_s24 }
  0x9c   :  { %v156_v44 = vpop.permute.xlu0 %155 }
  0x9d   :  { %v157_v45 = vsel %vm131_vm0, %v156_v44, %v498_v61 }
  0x9e   :  { %158 = vrot.lane.b32.xlu2 %v157_v45, %s402_s24 }
  0xa0   :  { %v202_v47 = vpop.permute.xlu1 %201 }
  0xa1   :  { %v203_v48 = vsel %vm131_vm0, %v202_v47, %v200_v23 }
  0xa2   :  { %204 = vrot.lane.b32.xlu1 %v203_v48, %s402_s24 }
  0xa6   :  { %227 = vrot.lane.b32.xlu2 %v226_v49, %s402_s24 }
  0xa8   :  { %v271_v50 = vpop.permute.xlu0 %270 }
  0xa9   :  { %v272_v51 = vsel %vm131_vm0, %v271_v50, %v269_v36 }
  0xaa   :  { %273 = vrot.lane.b32.xlu1 %v272_v51, %s402_s24 }
  0xf8   :  { %v159_v52 = vpop.permute.xlu2 %158 }
  0xf9   :  { %v160_v53 = vsel %vm131_vm0, %v159_v52, %v498_v61 }
  0xfa   :  { %162 = vrot.lane.b32.xlu0 %v160_v53, %s403_s9 }
 0x100   :  { %v228_v54 = vpop.permute.xlu2 %227 }
 0x101   :  { %v229_v55 = vsel %vm131_vm0, %v228_v54, %v223_v10 }
 0x102   :  { %231 = vrot.lane.b32.xlu0 %v229_v55, %s404_s10 }
 0x104   :  { %v182_v56 = vpop.permute.xlu0 %181 }
 0x105   :  { %v183_v57 = vsel %vm131_vm0, %v182_v56, %v479_v34 }
 0x106   :  { %185 = vrot.lane.b32.xlu1 %v183_v57, %s405_s11 }
 0x108   :  { %v136_v58 = vpop.permute.xlu1 %135 }
 0x109   :  { %v137_v59 = vsel %vm131_vm0, %v136_v58, %v488_v46  ;;  %v109_v46 = vstv %s320_s16 }
 0x10a   :  { %139 = vrot.lane.b32.xlu2 %v137_v59, %s406_s12  ;;  %v110_v5 = vmul.f32 %v109_v46, %v453_v1 }
 0x10c   :  { %v251_v60 = vpop.permute.xlu0 %250  ;;  %v111_v10 = vadd.f32 %v110_v5, %v108_v6 }
 0x10d   :  { %v252_v61 = vsel %vm131_vm0, %v251_v60, %v246_v32 }
 0x10e   :  { %254 = vrot.lane.b32.xlu1 %v252_v61, %s407_s13  ;;  %v114_v13 = vadd.f32 %v113_v9, %v111_v10 }
 0x110   :  { %v117_v14 = vadd.f32 %v116_v12, %v114_v13 }
 0x112   :  { %v118_v16 = vsub.f32 %v472_v22, %v117_v14  ;;  %v286_v22 = vstv %s569_s2 }
 0x114   :  { %v205_v62 = vpop.permute.xlu1 %204 }
 0x115   :  { %v206_v63 = vsel %vm131_vm0, %v205_v62, %v200_v23  ;;  %v87_v23 = vlaneseq }
 0x116   :  { %208 = vrot.lane.b32.xlu2 %v206_v63, %s408_s14 }
 0x117   :  { %v88_v25 = vand.u32 127, %v87_v23 }
 0x119   :  { %vm89_vm1 = vcmp.lt.s32.totalorder %v88_v25, 25 }
 0x11c   :  { %v274_v3 = vpop.permute.xlu1 %273 }
 0x11d   :  { %v275_v34 = vsel %vm131_vm0, %v274_v3, %v269_v36 }
 0x11e   :  { %277 = vrot.lane.b32.xlu2 %v275_v34, %s409_s15 }
 0x164   :  { %v140_v15 = vpop.permute.xlu2 %139 }
 0x165   :  { %v142_v17 = vadd.f32 %v140_v15, %v118_v16 }
 0x16c   :  { %v163_v18 = vpop.permute.xlu0 %162 }
 0x16d   :  { %v165_v20 = vadd.f32 %v163_v18, %v142_v17 }
 0x170   :  { %v209_v19 = vpop.permute.xlu2 %208 }
 0x174   :  { %v232_v24 = vpop.permute.xlu0 %231 }
 0x178   :  { %v186_v21 = vpop.permute.xlu1 %185  ;;  %v278_v27 = vpop.permute.xlu2 %277 }
 0x179   :  { %v188_v1 = vadd.f32 %v186_v21, %v165_v20 }
 0x17b   :  { %v211_v0 = vadd.f32 %v209_v19, %v188_v1 }
 0x17d   :  { %v234_v2 = vadd.f32 %v232_v24, %v211_v0 }
 0x180   :  { %v255_v26 = vpop.permute.xlu1 %254 }
 0x181   :  { %v257_v28 = vadd.f32 %v255_v26, %v234_v2 }
 0x183   :  { %v280_v7 = vadd.f32 %v278_v27, %v257_v28 }
 0x185   :  { %v281_v29 = vsel %vm89_vm1, %v280_v7, inf }
 0x186   :  { %v283_v30 = vsel %vm282_vm2, %v281_v29, inf }
 0x187   :  { %284 = vmin.xlane.f32.xlu0 %v283_v30 }
 0x1fa   :  { %v285_v32 = vpop.xlane.xlu0 %284 }
 0x1fb   :  { %v287_v35 = vadd.f32 %v286_v22, %v285_v32 }
 0x1fd   :  { %289 = vst.msk [vmem:[%s573_s6] sm:$0xff] %vm288_vm3, %v287_v35  ;;  %v293_v36 = vmul.f32 %v356_v31, %v287_v35 }
 0x1ff   :  { %v297_v37 = vadd.f32 %v357_v33, %v293_v36 }
 0x201   :  { %299 = vst.msk [vmem:[%s572_s5] sm:$0xff] %vm298_vm4, %v297_v37 }
 0x202   :  { %308 = vsyncpa [#allocation4], 1 }
 0x203   :  { %309 = vsyncpa [#allocation5], 1 }

</bundles_post_ra>
